<compile_context>
chip_gen: v6e
topology: v6e:2x2x1
jax: 0.10.0
libtpu: 0.0.40
codegen_flags: <defaults>
</compile_context>

<pallas_src>
import math

import jax
import jax.numpy as jnp
from jax.experimental import pallas as pl
from jax.experimental.pallas import tpu as pltpu

Z_DIM = 20
C_HID = 512
NEG_SLOPE = 0.2
SUBLANE = 8
MAX_TM = 1024


def _round_up(x, m):
    return ((x + m - 1) // m) * m


def _leaky_relu(x):
    return jnp.where(x >= 0, x, NEG_SLOPE * x)


# ----------------------------------------------------------------------------
# Fused kernel: logits = (LReLU(LReLU(z @ W1 + b1) @ W2 + b2)) @ W3 + b3
# Weights/biases are resident VMEM blocks; only the z tile and the (tm,1)
# logit tile move per grid step.  Matmul operands are bf16, accumulation and
# elementwise math are f32.
# ----------------------------------------------------------------------------
def _disc_kernel(z_ref, w1_ref, b1_ref, w2_ref, b2_ref, w3_ref, b3_ref, o_ref):
    h = jnp.dot(z_ref[...], w1_ref[...],
                preferred_element_type=jnp.float32) + b1_ref[...]
    h = _leaky_relu(h)
    h = jnp.dot(h.astype(jnp.bfloat16), w2_ref[...],
                preferred_element_type=jnp.float32) + b2_ref[...]
    h = _leaky_relu(h)
    o_ref[...] = jnp.dot(h.astype(jnp.bfloat16), w3_ref[...],
                         preferred_element_type=jnp.float32) + b3_ref[...]


# ----------------------------------------------------------------------------
# One-time parameter packing (transpose to [in,out], bf16 weights, f32 biases).
# Call once; reuse the result across every forward call.
# ----------------------------------------------------------------------------
def pack_params(params):
    return {
        "w1": params["w1"].T.astype(jnp.bfloat16),            # (z_dim, 512)
        "b1": params["b1"].reshape(1, C_HID).astype(jnp.float32),
        "w2": params["w2"].T.astype(jnp.bfloat16),             # (512, 512)
        "b2": params["b2"].reshape(1, C_HID).astype(jnp.float32),
        "w3": params["w3"].T.astype(jnp.bfloat16),             # (512, 1)
        "b3": params["b3"].reshape(1, 1).astype(jnp.float32),
    }


def discriminator_forward(z, packed):
    """z: [B, z_dim] f32, packed = pack_params(params) -> preds: [B, 1] f32."""
    B, zd = z.shape
    tm = min(MAX_TM, _round_up(B, SUBLANE))   # M tile (multiple of 8; 1024 cap)
    m_pad = _round_up(B, tm)

    # Ship z as bf16; only pad M if the batch doesn't land on the tile.
    z_p = z.astype(jnp.bfloat16)
    if m_pad != B:
        z_p = jnp.pad(z_p, ((0, m_pad - B), (0, 0)))

    const = lambda i: (0, 0)
    out = pl.pallas_call(
        _disc_kernel,
        out_shape=jax.ShapeDtypeStruct((m_pad, 1), jnp.float32),
        grid=(m_pad // tm,),
        in_specs=[
            pl.BlockSpec((tm, zd), lambda i: (i, 0)),            # z tile (pipelined)
            pl.BlockSpec(packed["w1"].shape, const),             # W1 (resident)
            pl.BlockSpec(packed["b1"].shape, const),             # b1
            pl.BlockSpec(packed["w2"].shape, const),             # W2
            pl.BlockSpec(packed["b2"].shape, const),             # b2
            pl.BlockSpec(packed["w3"].shape, const),             # W3 (512,1)
            pl.BlockSpec(packed["b3"].shape, const),             # b3 (1,1)
        ],
        out_specs=pl.BlockSpec((tm, 1), lambda i: (i, 0)),
        compiler_params=pltpu.CompilerParams(
            dimension_semantics=("parallel",),
        ),
    )(z_p, packed["w1"], packed["b1"], packed["w2"], packed["b2"],
      packed["w3"], packed["b3"])
    return out[:B] if m_pad != B else out


# ----------------------------------------------------------------------------
# Parameters (PyTorch nn.Linear layout: W [out, in], b [out]) and f32 reference
# ----------------------------------------------------------------------------
def init_params(key, z_dim=Z_DIM, c_hid=C_HID):
    def linear(k, fan_in, fan_out):
        kw, kb = jax.random.split(k)
        bound = 1.0 / math.sqrt(fan_in)
        w = jax.random.uniform(kw, (fan_out, fan_in), jnp.float32, -bound, bound)
        b = jax.random.uniform(kb, (fan_out,), jnp.float32, -bound, bound)
        return w, b

    k1, k2, k3 = jax.random.split(key, 3)
    w1, b1 = linear(k1, z_dim, c_hid)
    w2, b2 = linear(k2, c_hid, c_hid)
    w3, b3 = linear(k3, c_hid, 1)
    return {"w1": w1, "b1": b1, "w2": w2, "b2": b2, "w3": w3, "b3": b3}


def discriminator_ref(z, params):
    h = _leaky_relu(z @ params["w1"].T + params["b1"])
    h = _leaky_relu(h @ params["w2"].T + params["b2"])
    return h @ params["w3"].T + params["b3"]


if __name__ == "__main__":
    key = jax.random.PRNGKey(0)
    k_z, k_p = jax.random.split(key)
    B = 2
    z = jax.random.normal(k_z, (B, Z_DIM), jnp.float32)
    params = init_params(k_p)

    packed = jax.tree_util.tree_map(jax.block_until_ready, pack_params(params))

    fwd = jax.jit(discriminator_forward)
    preds = jax.block_until_ready(fwd(z, packed))

    assert preds.shape == (B, 1), preds.shape
    assert preds.dtype == jnp.float32
    assert bool(jnp.all(jnp.isfinite(preds)))

    # bf16-operand / f32-accumulate kernel vs pure-f32 reference: loose tolerance.
    ref = discriminator_ref(z, params)
    assert bool(jnp.allclose(preds, ref, rtol=3e-2, atol=3e-2)), (preds, ref)

    print("KERNEL_OK")
</pallas_src>

<mosaic_0001>
module attributes {stable_mosaic.version = 11 : i64} {
  func.func @_disc_kernel(%arg0: i32, %arg1: memref<8x20xbf16, #tpu.memory_space<vmem>>, %arg2: memref<20x512xbf16, #tpu.memory_space<vmem>>, %arg3: memref<1x512xf32, #tpu.memory_space<vmem>>, %arg4: memref<512x512xbf16, #tpu.memory_space<vmem>>, %arg5: memref<1x512xf32, #tpu.memory_space<vmem>>, %arg6: memref<512x1xbf16, #tpu.memory_space<vmem>>, %arg7: memref<1x1xf32, #tpu.memory_space<vmem>>, %arg8: memref<8x1xf32, #tpu.memory_space<vmem>>) attributes {dimension_semantics = [#tpu.dimension_semantics<parallel>], iteration_bounds = array<i64: 1>, scalar_prefetch = 0 : i64, scratch_operands = 0 : i64, tpu.core_type = #tpu.core_type<tc>, window_params = [{transform_indices = @transform_0, window_bounds = array<i64: 8, 20>}, {pipeline_mode = #tpu.pipeline_mode<synchronous>, transform_indices = @transform_1, window_bounds = array<i64: 20, 512>}, {pipeline_mode = #tpu.pipeline_mode<synchronous>, transform_indices = @transform_2, window_bounds = array<i64: 1, 512>}, {pipeline_mode = #tpu.pipeline_mode<synchronous>, transform_indices = @transform_3, window_bounds = array<i64: 512, 512>}, {pipeline_mode = #tpu.pipeline_mode<synchronous>, transform_indices = @transform_4, window_bounds = array<i64: 1, 512>}, {pipeline_mode = #tpu.pipeline_mode<synchronous>, transform_indices = @transform_5, window_bounds = array<i64: 512, 1>}, {pipeline_mode = #tpu.pipeline_mode<synchronous>, transform_indices = @transform_6, window_bounds = array<i64: 1, 1>}, {transform_indices = @transform_7, window_bounds = array<i64: 8, 1>}]} {
    %c0 = arith.constant 0 : index
    %c0_0 = arith.constant 0 : index
    %0 = vector.load %arg1[%c0, %c0_0] : memref<8x20xbf16, #tpu.memory_space<vmem>>, vector<8x20xbf16>
    %c0_1 = arith.constant 0 : index
    %c0_2 = arith.constant 0 : index
    %1 = vector.load %arg2[%c0_1, %c0_2] : memref<20x512xbf16, #tpu.memory_space<vmem>>, vector<20x512xbf16>
    %cst = arith.constant dense<0.000000e+00> : vector<8x512xf32>
    %2 = tpu.matmul %0, %1, %cst {dimension_numbers = #tpu.dot_dimension_numbers<[1], [0], [0], [1], [0, 0, 1, 1], [], []>} : vector<8x20xbf16>, vector<20x512xbf16>, vector<8x512xf32> -> vector<8x512xf32>
    %c0_3 = arith.constant 0 : index
    %c0_4 = arith.constant 0 : index
    %3 = vector.load %arg3[%c0_3, %c0_4] : memref<1x512xf32, #tpu.memory_space<vmem>>, vector<1x512xf32>
    %4 = vector.broadcast %3 : vector<1x512xf32> to vector<8x512xf32>
    %5 = arith.addf %2, %4 : vector<8x512xf32>
    %cst_5 = arith.constant 0.000000e+00 : f32
    %6 = vector.broadcast %cst_5 : f32 to vector<8x512xf32>
    %7 = arith.cmpf oge, %5, %6 : vector<8x512xf32>
    %cst_6 = arith.constant 2.000000e-01 : f32
    %8 = vector.broadcast %cst_6 : f32 to vector<8x512xf32>
    %9 = arith.mulf %8, %5 : vector<8x512xf32>
    %10 = arith.select %7, %5, %9 : vector<8x512xi1>, vector<8x512xf32>
    %11 = arith.truncf %10 : vector<8x512xf32> to vector<8x512xbf16>
    %c0_7 = arith.constant 0 : index
    %c0_8 = arith.constant 0 : index
    %12 = vector.load %arg4[%c0_7, %c0_8] : memref<512x512xbf16, #tpu.memory_space<vmem>>, vector<512x512xbf16>
    %cst_9 = arith.constant dense<0.000000e+00> : vector<8x512xf32>
    %13 = tpu.matmul %11, %12, %cst_9 {dimension_numbers = #tpu.dot_dimension_numbers<[1], [0], [0], [1], [0, 0, 1, 1], [], []>} : vector<8x512xbf16>, vector<512x512xbf16>, vector<8x512xf32> -> vector<8x512xf32>
    %c0_10 = arith.constant 0 : index
    %c0_11 = arith.constant 0 : index
    %14 = vector.load %arg5[%c0_10, %c0_11] : memref<1x512xf32, #tpu.memory_space<vmem>>, vector<1x512xf32>
    %15 = vector.broadcast %14 : vector<1x512xf32> to vector<8x512xf32>
    %16 = arith.addf %13, %15 : vector<8x512xf32>
    %cst_12 = arith.constant 0.000000e+00 : f32
    %17 = vector.broadcast %cst_12 : f32 to vector<8x512xf32>
    %18 = arith.cmpf oge, %16, %17 : vector<8x512xf32>
    %cst_13 = arith.constant 2.000000e-01 : f32
    %19 = vector.broadcast %cst_13 : f32 to vector<8x512xf32>
    %20 = arith.mulf %19, %16 : vector<8x512xf32>
    %21 = arith.select %18, %16, %20 : vector<8x512xi1>, vector<8x512xf32>
    %22 = arith.truncf %21 : vector<8x512xf32> to vector<8x512xbf16>
    %c0_14 = arith.constant 0 : index
    %c0_15 = arith.constant 0 : index
    %23 = vector.load %arg6[%c0_14, %c0_15] : memref<512x1xbf16, #tpu.memory_space<vmem>>, vector<512x1xbf16>
    %cst_16 = arith.constant dense<0.000000e+00> : vector<8x1xf32>
    %24 = tpu.matmul %22, %23, %cst_16 {dimension_numbers = #tpu.dot_dimension_numbers<[1], [0], [0], [1], [0, 0, 1, 1], [], []>} : vector<8x512xbf16>, vector<512x1xbf16>, vector<8x1xf32> -> vector<8x1xf32>
    %c0_17 = arith.constant 0 : index
    %c0_18 = arith.constant 0 : index
    %25 = vector.load %arg7[%c0_17, %c0_18] : memref<1x1xf32, #tpu.memory_space<vmem>>, vector<1x1xf32>
    %26 = vector.broadcast %25 : vector<1x1xf32> to vector<8x1xf32>
    %27 = arith.addf %24, %26 : vector<8x1xf32>
    %c0_19 = arith.constant 0 : index
    %c0_20 = arith.constant 0 : index
    %28 = vector.load %arg8[%c0_19, %c0_20] : memref<8x1xf32, #tpu.memory_space<vmem>>, vector<8x1xf32>
    tpu.vector_store %arg8[%c0_19, %c0_20], %27 {strides = array<i32>} : memref<8x1xf32, #tpu.memory_space<vmem>>, vector<8x1xf32>,
    return
  }
  func.func @transform_0(%arg0: i32) -> (i32, i32) {
    %c0_i32 = arith.constant 0 : i32
    %c0_i32_0 = arith.constant 0 : i32
    return %arg0, %c0_i32 : i32, i32
  }
  func.func @transform_1(%arg0: i32) -> (i32, i32) {
    %c0_i32 = arith.constant 0 : i32
    %c0_i32_0 = arith.constant 0 : i32
    %c0_i32_1 = arith.constant 0 : i32
    return %c0_i32, %c0_i32_0 : i32, i32
  }
  func.func @transform_2(%arg0: i32) -> (i32, i32) {
    %c0_i32 = arith.constant 0 : i32
    %c0_i32_0 = arith.constant 0 : i32
    %c0_i32_1 = arith.constant 0 : i32
    return %c0_i32, %c0_i32_0 : i32, i32
  }
  func.func @transform_3(%arg0: i32) -> (i32, i32) {
    %c0_i32 = arith.constant 0 : i32
    %c0_i32_0 = arith.constant 0 : i32
    %c0_i32_1 = arith.constant 0 : i32
    return %c0_i32, %c0_i32_0 : i32, i32
  }
  func.func @transform_4(%arg0: i32) -> (i32, i32) {
    %c0_i32 = arith.constant 0 : i32
    %c0_i32_0 = arith.constant 0 : i32
    %c0_i32_1 = arith.constant 0 : i32
    return %c0_i32, %c0_i32_0 : i32, i32
  }
  func.func @transform_5(%arg0: i32) -> (i32, i32) {
    %c0_i32 = arith.constant 0 : i32
    %c0_i32_0 = arith.constant 0 : i32
    %c0_i32_1 = arith.constant 0 : i32
    return %c0_i32, %c0_i32_0 : i32, i32
  }
  func.func @transform_6(%arg0: i32) -> (i32, i32) {
    %c0_i32 = arith.constant 0 : i32
    %c0_i32_0 = arith.constant 0 : i32
    %c0_i32_1 = arith.constant 0 : i32
    return %c0_i32, %c0_i32_0 : i32, i32
  }
  func.func @transform_7(%arg0: i32) -> (i32, i32) {
    %c0_i32 = arith.constant 0 : i32
    %c0_i32_0 = arith.constant 0 : i32
    return %arg0, %c0_i32 : i32, i32
  }
}

</mosaic_0001>

<bundles_post_ra>
// kernel: discriminator_forward.1
= control target key start
LH: loop header
LB: loop body
LE: loop exit
PB: predicated region body
PF: predicated region fallthrough
CT: control target
= control target key end

     0   :  { %s2220_s0 = inlined_call_operand.vmem [shape: bf16[8,20], index: 0, kind: input, shape index: {}]   ;;  %s2221_s1 = inlined_call_operand.vmem [shape: bf16[20,512], index: 1, kind: input, shape index: {}]   ;;  %s2222_s2 = inlined_call_operand.vmem [shape: f32[1,512], index: 2, kind: input, shape index: {}]   ;;  %s2223_s3 = inlined_call_operand.hbm [shape: bf16[512,512], index: 3, kind: input, shape index: {}]   ;;  %s2224_s4 = inlined_call_operand.vmem [shape: f32[1,512], index: 4, kind: input, shape index: {}]   ;;  %s2225_s5 = inlined_call_operand.vmem [shape: bf16[512,1], index: 5, kind: input, shape index: {}]   ;;  %s2226_s6 = inlined_call_operand.<no memory space> [shape: f32[1,1], index: 6, kind: input, shape index: {}]   ;;  %s2227_s7 = inlined_call_operand.vmem [shape: f32[8,1], index: 7, kind: output, shape index: {}]  }
   0x1   :  { %v12_v0 = vstv %s2226_s6 }
   0x2   :  { %13 = vst [vmem:[#allocation2] sm:$0x1] %v12_v0 }
   0x3   :  { %14 = vsyncpa [#allocation4], 0  ;;  %s2014_s26 = smov [#allocation3]  }
   0x4   :  { %s26_s27 = sshll.u32 %s2014_s26, 4  ;;  %s27_s27 = int_to_ptr.vmem [resolvable:$true] %s26_s27 }
   0x5   :  { %s2000_s28 = scalar_lea.vmem %s27_s27, 16384  ;;  %p2005_p1 = scmp.lt.s32.totalorder %s27_s27, %s27_s27 }
   0x6   :  { %p2001_p0 = scmp.ne.s32.totalorder %s27_s27, %s2000_s28  ;;  %p2006_p2 = scmp.lt.s32.totalorder %s2000_s28, %s2000_s28 }
   0x8   :  { %p2007_p3 = por %p2006_p2, %p2005_p1 }
   0xa   :  { %p2008_p4 = pnand %p2007_p3, %p2001_p0 }
   0xc   :  { %2011 = shalt.err (!%p2008_p4)
}
   0xd   :  { %s2015_s29 = smov 256   ;;  %s2016_s30 = smov 16  }
   0xe   :  { %32 = dma.hbm_to_vmem [thread:$0]  %s2223_s3, 16384, %s27_s27, [#allocation4], %s2015_s29, %s2015_s29, %s2016_s30  }
   0xf   :  { %2012 = dma.done.wait [#allocation4], 16384  }
  0x10   :  { %2013 = vsyncadd [#allocation4], 4294950912  ;;  %v2017_v1 = vmov 0   ;;  %v48_v2 = vld [vmem:[%s2221_s1 + $0x20] sm:$0x33]  ;;  %vm106_vm0 = vcmask 1041408  }
  0x11   :  { %151 = vmatprep.mubr.bf16.mxu0 %v2017_v1  ;;  %192 = vmatprep.mubr.bf16.mxu1 %v2017_v1  ;;  %v49_v3 = vld [vmem:[%s2221_s1 + $0x28] sm:$0x33]  ;;  %v1542_v4 = vcombine.high %v48_v2, %v48_v2  ;;  %v1541_v6 = vcombine.low %v48_v2, %v48_v2  ;;  %v1762_v8 = vld [vmem:[%s2221_s1 + $0x4] ss:$16 sps:$4 sm:$0xff]   ;;  %v1766_v12 = vld [vmem:[%s2221_s1] ss:$16 sps:$4 sm:$0xff]  }
  0x12   :  { %v1544_v5 = vcombine.high %v49_v3, %v49_v3  ;;  %v1543_v7 = vcombine.low %v49_v3, %v49_v3  ;;  %v1764_v9 = vld [vmem:[%s2221_s1 + $0xc] ss:$16 sps:$4 sm:$0xff]   ;;  %v1767_v13 = vld [vmem:[%s2221_s1 + $0x8] ss:$16 sps:$4 sm:$0xff]   ;;  %v43_v15 = vld [vmem:[%s2220_s0] sm:$0xf] }
  0x13   :  { %1545 = vmatprep.subr.msk.bf16.mxu0 %vm106_vm0, %v1542_v4  ;;  %v108_v10 = vsel %vm106_vm0, %v1541_v6, 0  ;;  %v1770_v14 = vld [vmem:[#allocation3 + $0xe4] ss:$16 sps:$4 sm:$0xff]   ;;  %v1768_v17 = vld [vmem:[#allocation3 + $0xe0] ss:$16 sps:$4 sm:$0xff]   ;;  %vm102_vm1 = vcmask 162816  }
  0x14   :  { %1547 = vmatprep.subr.msk.bf16.mxu1 %vm106_vm0, %v1544_v5  ;;  %v114_v11 = vsel %vm106_vm0, %v1543_v7, 0  ;;  %132 = vmatpush1.bf16.msra.mxu0 %v108_v10  ;;  %v1773_v16 = vld [vmem:[#allocation3 + $0x2e4] ss:$16 sps:$4 sm:$0xff]   ;;  %v1771_v18 = vld [vmem:[#allocation3 + $0x2e0] ss:$16 sps:$4 sm:$0xff]   ;;  %vm1530_vm10 = vcmask 7168  }
  0x15   :  { %173 = vmatpush1.bf16.msra.mxu1 %v114_v11  ;;  %133 = vmatprep.subr.bf16.mxu0 %v1762_v8  ;;  %v1776_v19 = vld [vmem:[#allocation3 + $0xc4] ss:$16 sps:$4 sm:$0xff]   ;;  %v1774_v21 = vld [vmem:[#allocation3 + $0xc0] ss:$16 sps:$4 sm:$0xff]  }
  0x16   :  { %174 = vmatprep.subr.bf16.mxu1 %v1764_v9  ;;  %v1779_v20 = vld [vmem:[#allocation3 + $0x2c4] ss:$16 sps:$4 sm:$0xff]   ;;  %v1777_v22 = vld [vmem:[#allocation3 + $0x2c0] ss:$16 sps:$4 sm:$0xff]  }
  0x17   :  { %v1782_v23 = vld [vmem:[#allocation3 + $0xa4] ss:$16 sps:$4 sm:$0xff]   ;;  %v1780_v25 = vld [vmem:[#allocation3 + $0xa0] ss:$16 sps:$4 sm:$0xff]  }
  0x18   :  { %134 = vmatpush1.bf16.msra.mxu0 %v1766_v12  ;;  %v1785_v24 = vld [vmem:[#allocation3 + $0x2a4] ss:$16 sps:$4 sm:$0xff]   ;;  %v1783_v26 = vld [vmem:[#allocation3 + $0x2a0] ss:$16 sps:$4 sm:$0xff]  }
  0x19   :  { %175 = vmatpush1.bf16.msra.mxu1 %v1767_v13  ;;  %1007 = vmatprep.subr.bf16.mxu0 %v1770_v14  ;;  %v1788_v27 = vld [vmem:[#allocation3 + $0x84] ss:$16 sps:$4 sm:$0xff]   ;;  %v1786_v29 = vld [vmem:[#allocation3 + $0x80] ss:$16 sps:$4 sm:$0xff]  }
  0x1a   :  { %1048 = vmatprep.subr.bf16.mxu1 %v1773_v16  ;;  %v1791_v28 = vld [vmem:[#allocation3 + $0x284] ss:$16 sps:$4 sm:$0xff]   ;;  %v1789_v30 = vld [vmem:[#allocation3 + $0x280] ss:$16 sps:$4 sm:$0xff]   ;;  %v1869_v16 = vld [vmem:[#allocation3 + $0x2ec] ss:$16 sps:$4 sm:$0xff]  }
  0x1b   :  { %1546 = vmatmul.mubr.msk.bf16.vlgmr.msra.gmra.mxu0 %vm102_vm1, %v43_v15  ;;  %v1794_v31 = vld [vmem:[#allocation3 + $0x64] ss:$16 sps:$4 sm:$0xff]   ;;  %v1792_v33 = vld [vmem:[#allocation3 + $0x60] ss:$16 sps:$4 sm:$0xff]  }
  0x1c   :  { %1548 = vmatmul.mubr.msk.bf16.vlgmr.msra.gmra.mxu1 %vm102_vm1, %v43_v15  ;;  %1008 = vmatpush1.bf16.msra.mxu0 %v1768_v17  ;;  %v1797_v32 = vld [vmem:[#allocation3 + $0x264] ss:$16 sps:$4 sm:$0xff]   ;;  %v1795_v34 = vld [vmem:[#allocation3 + $0x260] ss:$16 sps:$4 sm:$0xff]   ;;  %v1866_v15 = vld [vmem:[#allocation3 + $0xec] ss:$16 sps:$4 sm:$0xff]   ;;  %v52_v17 = vlaneseq }
  0x1d   :  { %1049 = vmatpush1.bf16.msra.mxu1 %v1771_v18  ;;  %1009 = vmatprep.subr.bf16.mxu0 %v1776_v19  ;;  %v1800_v35 = vld [vmem:[#allocation3 + $0x44] ss:$16 sps:$4 sm:$0xff]   ;;  %v1798_v37 = vld [vmem:[#allocation3 + $0x40] ss:$16 sps:$4 sm:$0xff]  }
  0x1e   :  { %1050 = vmatprep.subr.bf16.mxu1 %v1779_v20  ;;  %v1803_v36 = vld [vmem:[#allocation3 + $0x244] ss:$16 sps:$4 sm:$0xff]   ;;  %v1801_v38 = vld [vmem:[#allocation3 + $0x240] ss:$16 sps:$4 sm:$0xff]   ;;  %v2085_v18 = vshrl.u32 %v52_v17, 7 }
  0x1f   :  { %v1806_v39 = vld [vmem:[#allocation3 + $0x24] ss:$16 sps:$4 sm:$0xff]   ;;  %v1804_v41 = vld [vmem:[#allocation3 + $0x20] ss:$16 sps:$4 sm:$0xff]   ;;  %v1909_v17 = vld [vmem:[#allocation3 + $0x208] ss:$16 sps:$4 sm:$0xff]  }
  0x20   :  { %1010 = vmatpush1.bf16.msra.mxu0 %v1774_v21  ;;  %v1809_v40 = vld [vmem:[#allocation3 + $0x224] ss:$16 sps:$4 sm:$0xff]   ;;  %v1807_v42 = vld [vmem:[#allocation3 + $0x220] ss:$16 sps:$4 sm:$0xff]   ;;  %v54_v19 = vsub.s32 0, %v2085_v18  ;;  %v62_v20 = vsub.s32 2, %v2085_v18 }
  0x21   :  { %1051 = vmatpush1.bf16.msra.mxu1 %v1777_v22  ;;  %1011 = vmatprep.subr.bf16.mxu0 %v1782_v23  ;;  %v1812_v43 = vld [vmem:[#allocation3 + $0x4] ss:$16 sps:$4 sm:$0xff]   ;;  %v1810_v45 = vld [vmem:[#allocation3] ss:$16 sps:$4 sm:$0xff]   ;;  %v58_v22 = vsub.s32 1, %v2085_v18  ;;  %v66_v23 = vsub.s32 3, %v2085_v18 }
  0x22   :  { %1052 = vmatprep.subr.bf16.mxu1 %v1785_v24  ;;  %v1815_v44 = vld [vmem:[#allocation3 + $0x204] ss:$16 sps:$4 sm:$0xff]   ;;  %v1813_v46 = vld [vmem:[#allocation3 + $0x200] ss:$16 sps:$4 sm:$0xff]  }
  0x23   :  { %v1818_v47 = vld [vmem:[#allocation3 + $0x1e4] ss:$16 sps:$4 sm:$0xff]   ;;  %v1816_v49 = vld [vmem:[#allocation3 + $0x1e0] ss:$16 sps:$4 sm:$0xff]  }
  0x24   :  { %1012 = vmatpush1.bf16.msra.mxu0 %v1780_v25  ;;  %v1821_v48 = vld [vmem:[#allocation3 + $0x3e4] ss:$16 sps:$4 sm:$0xff]   ;;  %v1819_v50 = vld [vmem:[#allocation3 + $0x3e0] ss:$16 sps:$4 sm:$0xff]  }
  0x25   :  { %1053 = vmatpush1.bf16.msra.mxu1 %v1783_v26  ;;  %1013 = vmatprep.subr.bf16.mxu0 %v1788_v27  ;;  %v1824_v51 = vld [vmem:[#allocation3 + $0x1c4] ss:$16 sps:$4 sm:$0xff]   ;;  %v1822_v53 = vld [vmem:[#allocation3 + $0x1c0] ss:$16 sps:$4 sm:$0xff]  }
  0x26   :  { %1054 = vmatprep.subr.bf16.mxu1 %v1791_v28  ;;  %v1827_v52 = vld [vmem:[#allocation3 + $0x3c4] ss:$16 sps:$4 sm:$0xff]   ;;  %v1825_v54 = vld [vmem:[#allocation3 + $0x3c0] ss:$16 sps:$4 sm:$0xff]  }
  0x27   :  { %v1830_v55 = vld [vmem:[#allocation3 + $0x1a4] ss:$16 sps:$4 sm:$0xff]   ;;  %v1828_v57 = vld [vmem:[#allocation3 + $0x1a0] ss:$16 sps:$4 sm:$0xff]  }
  0x28   :  { %1014 = vmatpush1.bf16.msra.mxu0 %v1786_v29  ;;  %v1833_v56 = vld [vmem:[#allocation3 + $0x3a4] ss:$16 sps:$4 sm:$0xff]   ;;  %v1831_v58 = vld [vmem:[#allocation3 + $0x3a0] ss:$16 sps:$4 sm:$0xff]  }
  0x29   :  { %1055 = vmatpush1.bf16.msra.mxu1 %v1789_v30  ;;  %1015 = vmatprep.subr.bf16.mxu0 %v1794_v31  ;;  %v1836_v59 = vld [vmem:[#allocation3 + $0x184] ss:$16 sps:$4 sm:$0xff]   ;;  %v1834_v61 = vld [vmem:[#allocation3 + $0x180] ss:$16 sps:$4 sm:$0xff]  }
  0x2a   :  { %1056 = vmatprep.subr.bf16.mxu1 %v1797_v32  ;;  %v1839_v60 = vld [vmem:[#allocation3 + $0x384] ss:$16 sps:$4 sm:$0xff]   ;;  %v1837_v62 = vld [vmem:[#allocation3 + $0x380] ss:$16 sps:$4 sm:$0xff]  }
  0x2b   :  { %v1842_v63 = vld [vmem:[#allocation3 + $0x164] ss:$16 sps:$4 sm:$0xff]   ;;  %v1840_v1 = vld [vmem:[#allocation3 + $0x160] ss:$16 sps:$4 sm:$0xff]  }
  0x2c   :  { %1016 = vmatpush1.bf16.msra.mxu0 %v1792_v33  ;;  %v1845_v0 = vld [vmem:[#allocation3 + $0x364] ss:$16 sps:$4 sm:$0xff]   ;;  %v1843_v2 = vld [vmem:[#allocation3 + $0x360] ss:$16 sps:$4 sm:$0xff]  }
  0x2d   :  { %1057 = vmatpush1.bf16.msra.mxu1 %v1795_v34  ;;  %1017 = vmatprep.subr.bf16.mxu0 %v1800_v35  ;;  %v1848_v3 = vld [vmem:[#allocation3 + $0x144] ss:$16 sps:$4 sm:$0xff]   ;;  %v1846_v5 = vld [vmem:[#allocation3 + $0x140] ss:$16 sps:$4 sm:$0xff]  }
  0x2e   :  { %1058 = vmatprep.subr.bf16.mxu1 %v1803_v36  ;;  %v1851_v4 = vld [vmem:[#allocation3 + $0x344] ss:$16 sps:$4 sm:$0xff]   ;;  %v1849_v6 = vld [vmem:[#allocation3 + $0x340] ss:$16 sps:$4 sm:$0xff]  }
  0x2f   :  { %v1854_v7 = vld [vmem:[#allocation3 + $0x124] ss:$16 sps:$4 sm:$0xff]   ;;  %v1852_v9 = vld [vmem:[#allocation3 + $0x120] ss:$16 sps:$4 sm:$0xff]  }
  0x30   :  { %1018 = vmatpush1.bf16.msra.mxu0 %v1798_v37  ;;  %v1857_v8 = vld [vmem:[#allocation3 + $0x324] ss:$16 sps:$4 sm:$0xff]   ;;  %v1855_v10 = vld [vmem:[#allocation3 + $0x320] ss:$16 sps:$4 sm:$0xff]  }
  0x31   :  { %1059 = vmatpush1.bf16.msra.mxu1 %v1801_v38  ;;  %1019 = vmatprep.subr.bf16.mxu0 %v1806_v39  ;;  %v1860_v11 = vld [vmem:[#allocation3 + $0x104] ss:$16 sps:$4 sm:$0xff]   ;;  %v1858_v13 = vld [vmem:[#allocation3 + $0x100] ss:$16 sps:$4 sm:$0xff]  }
  0x32   :  { %1060 = vmatprep.subr.bf16.mxu1 %v1809_v40  ;;  %v1863_v12 = vld [vmem:[#allocation3 + $0x304] ss:$16 sps:$4 sm:$0xff]   ;;  %v1861_v14 = vld [vmem:[#allocation3 + $0x300] ss:$16 sps:$4 sm:$0xff]  }
  0x33   :  { %v50_v21 = vld [vmem:[%s2222_s2] sm:$0xf] }
  0x34   :  { %1020 = vmatpush1.bf16.msra.mxu0 %v1804_v41  ;;  %v55_v24 = vrot.slane %v50_v21, %v54_v19  ;;  %v63_v25 = vrot.slane %v50_v21, %v62_v20  ;;  %v59_v28 = vrot.slane %v50_v21, %v58_v22  ;;  %v67_v29 = vrot.slane %v50_v21, %v66_v23  ;;  %v1914_v21 = vld [vmem:[#allocation3 + $0x1ec] ss:$16 sps:$4 sm:$0xff]  }
  0x35   :  { %1061 = vmatpush1.bf16.msra.mxu1 %v1807_v42  ;;  %1021 = vmatprep.subr.bf16.mxu0 %v1812_v43 }
  0x36   :  { %1062 = vmatprep.subr.bf16.mxu1 %v1815_v44 }
  0x38   :  { %1022 = vmatpush1.bf16.msra.mxu0 %v1810_v45 }
  0x39   :  { %1063 = vmatpush1.bf16.msra.mxu1 %v1813_v46  ;;  %1023 = vmatprep.subr.bf16.mxu0 %v1818_v47 }
  0x3a   :  { %1064 = vmatprep.subr.bf16.mxu1 %v1821_v48 }
  0x3c   :  { %1024 = vmatpush2.bf16.msra.mxu0 %v1816_v49  ;;  %v1864_v49 = vld [vmem:[#allocation3 + $0xe8] ss:$16 sps:$4 sm:$0xff]  }
  0x3d   :  { %1065 = vmatpush2.bf16.msra.mxu1 %v1819_v50  ;;  %1025 = vmatprep.subr.bf16.mxu0 %v1824_v51 }
  0x3e   :  { %1066 = vmatprep.subr.bf16.mxu1 %v1827_v52  ;;  %v1867_v52 = vld [vmem:[#allocation3 + $0x2e8] ss:$16 sps:$4 sm:$0xff]  }
  0x40   :  { %1026 = vmatpush2.bf16.msra.mxu0 %v1822_v53 }
  0x41   :  { %1067 = vmatpush2.bf16.msra.mxu1 %v1825_v54  ;;  %1027 = vmatprep.subr.bf16.mxu0 %v1830_v55  ;;  %v1872_v54 = vld [vmem:[#allocation3 + $0xcc] ss:$16 sps:$4 sm:$0xff]  }
  0x42   :  { %1068 = vmatprep.subr.bf16.mxu1 %v1833_v56  ;;  %v1875_v55 = vld [vmem:[#allocation3 + $0x2cc] ss:$16 sps:$4 sm:$0xff]   ;;  %v1870_v56 = vld [vmem:[#allocation3 + $0xc8] ss:$16 sps:$4 sm:$0xff]  }
  0x44   :  { %1028 = vmatpush2.bf16.msra.mxu0 %v1828_v57  ;;  %v1873_v57 = vld [vmem:[#allocation3 + $0x2c8] ss:$16 sps:$4 sm:$0xff]  }
  0x45   :  { %1069 = vmatpush2.bf16.msra.mxu1 %v1831_v58  ;;  %1029 = vmatprep.subr.bf16.mxu0 %v1836_v59  ;;  %v1878_v58 = vld [vmem:[#allocation3 + $0xac] ss:$16 sps:$4 sm:$0xff]  }
  0x46   :  { %1070 = vmatprep.subr.bf16.mxu1 %v1839_v60  ;;  %v1881_v59 = vld [vmem:[#allocation3 + $0x2ac] ss:$16 sps:$4 sm:$0xff]   ;;  %v1876_v60 = vld [vmem:[#allocation3 + $0xa8] ss:$16 sps:$4 sm:$0xff]  }
  0x48   :  { %1030 = vmatpush2.bf16.msra.mxu0 %v1834_v61  ;;  %v1879_v61 = vld [vmem:[#allocation3 + $0x2a8] ss:$16 sps:$4 sm:$0xff]  }
  0x49   :  { %1071 = vmatpush2.bf16.msra.mxu1 %v1837_v62  ;;  %1031 = vmatprep.subr.bf16.mxu0 %v1842_v63  ;;  %v1884_v62 = vld [vmem:[#allocation3 + $0x8c] ss:$16 sps:$4 sm:$0xff]  }
  0x4a   :  { %1072 = vmatprep.subr.bf16.mxu1 %v1845_v0  ;;  %v1887_v63 = vld [vmem:[#allocation3 + $0x28c] ss:$16 sps:$4 sm:$0xff]   ;;  %v1882_v0 = vld [vmem:[#allocation3 + $0x88] ss:$16 sps:$4 sm:$0xff]  }
  0x4c   :  { %1032 = vmatpush2.bf16.msra.mxu0 %v1840_v1  ;;  %v1885_v1 = vld [vmem:[#allocation3 + $0x288] ss:$16 sps:$4 sm:$0xff]  }
  0x4d   :  { %1073 = vmatpush2.bf16.msra.mxu1 %v1843_v2  ;;  %1033 = vmatprep.subr.bf16.mxu0 %v1848_v3  ;;  %v1890_v2 = vld [vmem:[#allocation3 + $0x6c] ss:$16 sps:$4 sm:$0xff]  }
  0x4e   :  { %1074 = vmatprep.subr.bf16.mxu1 %v1851_v4  ;;  %v1893_v3 = vld [vmem:[#allocation3 + $0x26c] ss:$16 sps:$4 sm:$0xff]   ;;  %v1888_v4 = vld [vmem:[#allocation3 + $0x68] ss:$16 sps:$4 sm:$0xff]  }
  0x50   :  { %1034 = vmatpush2.bf16.msra.mxu0 %v1846_v5  ;;  %v1891_v5 = vld [vmem:[#allocation3 + $0x268] ss:$16 sps:$4 sm:$0xff]  }
  0x51   :  { %1075 = vmatpush2.bf16.msra.mxu1 %v1849_v6  ;;  %1035 = vmatprep.subr.bf16.mxu0 %v1854_v7  ;;  %v1896_v6 = vld [vmem:[#allocation3 + $0x4c] ss:$16 sps:$4 sm:$0xff]  }
  0x52   :  { %1076 = vmatprep.subr.bf16.mxu1 %v1857_v8  ;;  %v1899_v7 = vld [vmem:[#allocation3 + $0x24c] ss:$16 sps:$4 sm:$0xff]   ;;  %v1894_v8 = vld [vmem:[#allocation3 + $0x48] ss:$16 sps:$4 sm:$0xff]  }
  0x54   :  { %1036 = vmatpush2.bf16.msra.mxu0 %v1852_v9  ;;  %v1897_v9 = vld [vmem:[#allocation3 + $0x248] ss:$16 sps:$4 sm:$0xff]  }
  0x55   :  { %1077 = vmatpush2.bf16.msra.mxu1 %v1855_v10  ;;  %1037 = vmatprep.subr.bf16.mxu0 %v1860_v11  ;;  %v1902_v10 = vld [vmem:[#allocation3 + $0x2c] ss:$16 sps:$4 sm:$0xff]  }
  0x56   :  { %1078 = vmatprep.subr.bf16.mxu1 %v1863_v12  ;;  %v1905_v11 = vld [vmem:[#allocation3 + $0x22c] ss:$16 sps:$4 sm:$0xff]   ;;  %v1900_v12 = vld [vmem:[#allocation3 + $0x28] ss:$16 sps:$4 sm:$0xff]  }
  0x58   :  { %1038 = vmatpush2.bf16.msra.mxu0 %v1858_v13  ;;  %v1903_v13 = vld [vmem:[#allocation3 + $0x228] ss:$16 sps:$4 sm:$0xff]  }
  0x59   :  { %1079 = vmatpush2.bf16.msra.mxu1 %v1861_v14  ;;  %1089 = vmatprep.subr.bf16.mxu0 %v1866_v15  ;;  %v1908_v14 = vld [vmem:[#allocation3 + $0xc] ss:$16 sps:$4 sm:$0xff]  }
  0x5a   :  { %1130 = vmatprep.subr.bf16.mxu1 %v1869_v16  ;;  %v1911_v15 = vld [vmem:[#allocation3 + $0x20c] ss:$16 sps:$4 sm:$0xff]   ;;  %v1906_v16 = vld [vmem:[#allocation3 + $0x8] ss:$16 sps:$4 sm:$0xff]  }
  0xdb   :  { %v153_v26 = vpop.f32.mrf.mxu0 }
  0xdc   :  { %v194_v27 = vpop.f32.mrf.mxu1  ;;  %v154_v30 = vadd.f32 %v153_v26, %v55_v24  ;;  %v1917_v24 = vld [vmem:[#allocation3 + $0x3ec] ss:$16 sps:$4 sm:$0xff]   ;;  %v1915_v26 = vld [vmem:[#allocation3 + $0x3e8] ss:$16 sps:$4 sm:$0xff]  }
  0xdd   :  { %v195_v31 = vadd.f32 %v194_v27, %v63_v25  ;;  %v155_v32 = vpop.f32.mrf.mxu0  ;;  %v1912_v25 = vld [vmem:[#allocation3 + $0x1e8] ss:$16 sps:$4 sm:$0xff]   ;;  %v1920_v27 = vld [vmem:[#allocation3 + $0x1cc] ss:$16 sps:$4 sm:$0xff]  }
  0xde   :  { %v196_v33 = vpop.f32.mrf.mxu1  ;;  %v205_v34 = vmul.f32 0.2, %v154_v30  ;;  %vm201_vm2 = vcmp.ge.f32.partialorder %v154_v30, 0.0  ;;  %v156_v36 = vadd.f32 %v155_v32, %v59_v28  ;;  %v1923_v28 = vld [vmem:[#allocation3 + $0x3cc] ss:$16 sps:$4 sm:$0xff]  }
  0xdf   :  { %v207_v35 = vmul.f32 0.2, %v195_v31  ;;  %v197_v37 = vadd.f32 %v196_v33, %v67_v29  ;;  %v157_v38 = vpop.f32.mrf.mxu0  ;;  %vm203_vm3 = vcmp.ge.f32.partialorder %v195_v31, 0.0  ;;  %v1918_v29 = vld [vmem:[#allocation3 + $0x1c8] ss:$16 sps:$4 sm:$0xff]  }
  0xe0   :  { %v198_v39 = vpop.f32.mrf.mxu1  ;;  %vm202_vm4 = vcmp.ge.f32.partialorder %v156_v36, 0.0  ;;  %v206_v40 = vmul.f32 0.2, %v156_v36  ;;  %v209_v43 = vsel %vm201_vm2, %v154_v30, %v205_v34  ;;  %v1921_v30 = vld [vmem:[#allocation3 + $0x3c8] ss:$16 sps:$4 sm:$0xff]  }
  0xe1   :  { %v158_v41 = vpop.f32.mrf.mxu0  ;;  %vm204_vm5 = vcmp.ge.f32.partialorder %v197_v37, 0.0  ;;  %v208_v44 = vmul.f32 0.2, %v197_v37  ;;  %v211_v45 = vsel %vm203_vm3, %v195_v31, %v207_v35  ;;  %v2102_v50 = vpack.c.bf16 %v209_v43, %v209_v43  ;;  %v1926_v31 = vld [vmem:[#allocation3 + $0x1ac] ss:$16 sps:$4 sm:$0xff]  }
  0xe2   :  { %v199_v42 = vpop.f32.mrf.mxu1  ;;  %v210_v46 = vsel %vm202_vm4, %v156_v36, %v206_v40  ;;  %v2104_v53 = vpack.c.bf16 %v211_v45, %v211_v45  ;;  %v1929_v32 = vld [vmem:[#allocation3 + $0x3ac] ss:$16 sps:$4 sm:$0xff]   ;;  %v1924_v33 = vld [vmem:[#allocation3 + $0x1a8] ss:$16 sps:$4 sm:$0xff]  }
  0xe3   :  { %v214_v47 = vpack.c.bf16 %v210_v46, %v210_v46  ;;  %v212_v48 = vsel %vm204_vm5, %v197_v37, %v208_v44  ;;  %v1927_v34 = vld [vmem:[#allocation3 + $0x3a8] ss:$16 sps:$4 sm:$0xff]   ;;  %v1932_v35 = vld [vmem:[#allocation3 + $0x18c] ss:$16 sps:$4 sm:$0xff]  }
  0xe4   :  { %v216_v51 = vpack.c.bf16 %v212_v48, %v212_v48  ;;  %v1935_v36 = vld [vmem:[#allocation3 + $0x38c] ss:$16 sps:$4 sm:$0xff]   ;;  %v1930_v37 = vld [vmem:[#allocation3 + $0x188] ss:$16 sps:$4 sm:$0xff]  }
  0xe5   :  { %1039 = vmatprep.mubr.bf16.mxu0 %v214_v47  ;;  %v1933_v38 = vld [vmem:[#allocation3 + $0x388] ss:$16 sps:$4 sm:$0xff]   ;;  %v1938_v39 = vld [vmem:[#allocation3 + $0x16c] ss:$16 sps:$4 sm:$0xff]  }
  0xe6   :  { %1080 = vmatprep.mubr.bf16.mxu1 %v216_v51  ;;  %1040 = vmatmul.mubr.bf16.vlgmr.msra.gmra.mxu0 %v2102_v50  ;;  %v1941_v40 = vld [vmem:[#allocation3 + $0x36c] ss:$16 sps:$4 sm:$0xff]   ;;  %v1936_v41 = vld [vmem:[#allocation3 + $0x168] ss:$16 sps:$4 sm:$0xff]  }
  0xe7   :  { %1081 = vmatmul.mubr.bf16.vlgmr.msra.gmra.mxu1 %v2104_v53  ;;  %1090 = vmatpush1.bf16.msra.mxu0 %v1864_v49  ;;  %v1939_v42 = vld [vmem:[#allocation3 + $0x368] ss:$16 sps:$4 sm:$0xff]   ;;  %v1944_v43 = vld [vmem:[#allocation3 + $0x14c] ss:$16 sps:$4 sm:$0xff]  }
  0xe8   :  { %1131 = vmatpush1.bf16.msra.mxu1 %v1867_v52  ;;  %1121 = vmatprep.mubr.bf16.mxu0 %v214_v47  ;;  %v1947_v44 = vld [vmem:[#allocation3 + $0x34c] ss:$16 sps:$4 sm:$0xff]   ;;  %v1942_v45 = vld [vmem:[#allocation3 + $0x148] ss:$16 sps:$4 sm:$0xff]  }
  0xe9   :  { %1162 = vmatprep.mubr.bf16.mxu1 %v216_v51  ;;  %1091 = vmatprep.subr.bf16.mxu0 %v1872_v54  ;;  %v1945_v46 = vld [vmem:[#allocation3 + $0x348] ss:$16 sps:$4 sm:$0xff]   ;;  %v1950_v47 = vld [vmem:[#allocation3 + $0x12c] ss:$16 sps:$4 sm:$0xff]  }
  0xea   :  { %1132 = vmatprep.subr.bf16.mxu1 %v1875_v55  ;;  %v1953_v48 = vld [vmem:[#allocation3 + $0x32c] ss:$16 sps:$4 sm:$0xff]   ;;  %v1948_v49 = vld [vmem:[#allocation3 + $0x128] ss:$16 sps:$4 sm:$0xff]  }
  0xeb   :  { %1092 = vmatpush1.bf16.msra.mxu0 %v1870_v56  ;;  %v1951_v51 = vld [vmem:[#allocation3 + $0x328] ss:$16 sps:$4 sm:$0xff]   ;;  %v1956_v52 = vld [vmem:[#allocation3 + $0x10c] ss:$16 sps:$4 sm:$0xff]  }
  0xec   :  { %1133 = vmatpush1.bf16.msra.mxu1 %v1873_v57  ;;  %1093 = vmatprep.subr.bf16.mxu0 %v1878_v58  ;;  %v1959_v54 = vld [vmem:[#allocation3 + $0x30c] ss:$16 sps:$4 sm:$0xff]   ;;  %v1954_v55 = vld [vmem:[#allocation3 + $0x108] ss:$16 sps:$4 sm:$0xff]  }
  0xed   :  { %1134 = vmatprep.subr.bf16.mxu1 %v1881_v59  ;;  %v1957_v56 = vld [vmem:[#allocation3 + $0x308] ss:$16 sps:$4 sm:$0xff]   ;;  %v1962_v59 = vld [vmem:[%s2225_s5 + $0x70] sm:$0xff]  }
  0xee   :  { %v1960_v57 = vld [vmem:[%s2225_s5 + $0x78] sm:$0xff]  }
  0xef   :  { %1094 = vmatpush1.bf16.msra.mxu0 %v1876_v60  ;;  %v1961_v58 = vld [vmem:[%s2225_s5 + $0x38] sm:$0xff]   ;;  %v1963_v60 = vld [vmem:[%s2225_s5 + $0x30] sm:$0xff]  }
  0xf0   :  { %1135 = vmatpush1.bf16.msra.mxu1 %v1879_v61  ;;  %1095 = vmatprep.subr.bf16.mxu0 %v1884_v62  ;;  %v1964_v61 = vld [vmem:[%s2225_s5 + $0x68] sm:$0xff]  }
  0xf1   :  { %1136 = vmatprep.subr.bf16.mxu1 %v1887_v63  ;;  %v1965_v62 = vld [vmem:[%s2225_s5 + $0x28] sm:$0xff]   ;;  %v1968_v63 = vld [vmem:[%s2225_s5 + $0x58] sm:$0xff]  }
  0xf3   :  { %1096 = vmatpush1.bf16.msra.mxu0 %v1882_v0  ;;  %v1969_v0 = vld [vmem:[%s2225_s5 + $0x18] sm:$0xff]  }
  0xf4   :  { %1137 = vmatpush1.bf16.msra.mxu1 %v1885_v1  ;;  %1097 = vmatprep.subr.bf16.mxu0 %v1890_v2  ;;  %v1976_v1 = vld [vmem:[%s2225_s5 + $0xf8] sm:$0xff]  }
  0xf5   :  { %1138 = vmatprep.subr.bf16.mxu1 %v1893_v3  ;;  %v1977_v2 = vld [vmem:[%s2225_s5 + $0xb8] sm:$0xff]   ;;  %v1978_v3 = vld [vmem:[%s2225_s5 + $0xf0] sm:$0xff]  }
  0xf7   :  { %1098 = vmatpush1.bf16.msra.mxu0 %v1888_v4  ;;  %v1970_v4 = vld [vmem:[%s2225_s5 + $0x50] sm:$0xff]  }
  0xf8   :  { %1139 = vmatpush1.bf16.msra.mxu1 %v1891_v5  ;;  %1099 = vmatprep.subr.bf16.mxu0 %v1896_v6  ;;  %v1979_v5 = vld [vmem:[%s2225_s5 + $0xb0] sm:$0xff]  }
  0xf9   :  { %1140 = vmatprep.subr.bf16.mxu1 %v1899_v7  ;;  %v1971_v6 = vld [vmem:[%s2225_s5 + $0x10] sm:$0xff]   ;;  %v1980_v7 = vld [vmem:[%s2225_s5 + $0xe8] sm:$0xff]  }
  0xfb   :  { %1100 = vmatpush1.bf16.msra.mxu0 %v1894_v8  ;;  %v1972_v8 = vld [vmem:[%s2225_s5 + $0x48] sm:$0xff]  }
  0xfc   :  { %1141 = vmatpush1.bf16.msra.mxu1 %v1897_v9  ;;  %1101 = vmatprep.subr.bf16.mxu0 %v1902_v10  ;;  %v1981_v9 = vld [vmem:[%s2225_s5 + $0xa8] sm:$0xff]  }
  0xfd   :  { %1142 = vmatprep.subr.bf16.mxu1 %v1905_v11  ;;  %v1973_v10 = vld [vmem:[%s2225_s5 + $0x8] sm:$0xff]   ;;  %v1982_v11 = vld [vmem:[%s2225_s5 + $0xe0] sm:$0xff]  }
  0xff   :  { %1102 = vmatpush1.bf16.msra.mxu0 %v1900_v12  ;;  %v1974_v12 = vld [vmem:[%s2225_s5 + $0x40] sm:$0xff]  }
 0x100   :  { %1143 = vmatpush1.bf16.msra.mxu1 %v1903_v13  ;;  %1103 = vmatprep.subr.bf16.mxu0 %v1908_v14  ;;  %v1983_v13 = vld [vmem:[%s2225_s5 + $0xa0] sm:$0xff]  }
 0x101   :  { %1144 = vmatprep.subr.bf16.mxu1 %v1911_v15  ;;  %v1975_v14 = vld [vmem:[%s2225_s5] sm:$0xff]   ;;  %v1984_v15 = vld [vmem:[%s2225_s5 + $0xd8] sm:$0xff]  }
 0x103   :  { %1104 = vmatpush1.bf16.msra.mxu0 %v1906_v16  ;;  %v1985_v16 = vld [vmem:[%s2225_s5 + $0x98] sm:$0xff]  }
 0x104   :  { %1145 = vmatpush1.bf16.msra.mxu1 %v1909_v17  ;;  %1105 = vmatprep.subr.bf16.mxu0 %v1914_v21  ;;  %v1986_v17 = vld [vmem:[%s2225_s5 + $0xd0] sm:$0xff]  }
 0x105   :  { %1146 = vmatprep.subr.bf16.mxu1 %v1917_v24  ;;  %v1987_v21 = vld [vmem:[%s2225_s5 + $0x90] sm:$0xff]   ;;  %v1988_v24 = vld [vmem:[%s2225_s5 + $0xc8] sm:$0xff]  }
 0x107   :  { %1106 = vmatpush2.bf16.msra.mxu0 %v1912_v25  ;;  %v1989_v25 = vld [vmem:[%s2225_s5 + $0x88] sm:$0xff]  }
 0x108   :  { %1147 = vmatpush2.bf16.msra.mxu1 %v1915_v26  ;;  %1107 = vmatprep.subr.bf16.mxu0 %v1920_v27  ;;  %v1990_v26 = vld [vmem:[%s2225_s5 + $0xc0] sm:$0xff]  }
 0x109   :  { %1148 = vmatprep.subr.bf16.mxu1 %v1923_v28  ;;  %v1991_v27 = vld [vmem:[%s2225_s5 + $0x80] sm:$0xff]  }
 0x10a   :  { %v345_v28 = vld [vmem:[%s2224_s4] sm:$0xf] }
 0x10b   :  { %1108 = vmatpush2.bf16.msra.mxu0 %v1918_v29  ;;  %v350_v29 = vrot.slane %v345_v28, %v54_v19 }
 0x10c   :  { %1149 = vmatpush2.bf16.msra.mxu1 %v1921_v30  ;;  %1109 = vmatprep.subr.bf16.mxu0 %v1926_v31  ;;  %v354_v30 = vrot.slane %v345_v28, %v58_v22 }
 0x10d   :  { %1150 = vmatprep.subr.bf16.mxu1 %v1929_v32 }
 0x10f   :  { %1110 = vmatpush2.bf16.msra.mxu0 %v1924_v33 }
 0x110   :  { %1151 = vmatpush2.bf16.msra.mxu1 %v1927_v34  ;;  %1111 = vmatprep.subr.bf16.mxu0 %v1932_v35 }
 0x111   :  { %1152 = vmatprep.subr.bf16.mxu1 %v1935_v36 }
 0x113   :  { %1112 = vmatpush2.bf16.msra.mxu0 %v1930_v37 }
 0x114   :  { %1153 = vmatpush2.bf16.msra.mxu1 %v1933_v38  ;;  %1113 = vmatprep.subr.bf16.mxu0 %v1938_v39 }
 0x115   :  { %1154 = vmatprep.subr.bf16.mxu1 %v1941_v40 }
 0x117   :  { %1114 = vmatpush2.bf16.msra.mxu0 %v1936_v41 }
 0x118   :  { %1155 = vmatpush2.bf16.msra.mxu1 %v1939_v42  ;;  %1115 = vmatprep.subr.bf16.mxu0 %v1944_v43 }
 0x119   :  { %1156 = vmatprep.subr.bf16.mxu1 %v1947_v44 }
 0x11b   :  { %1116 = vmatpush2.bf16.msra.mxu0 %v1942_v45 }
 0x11c   :  { %1157 = vmatpush2.bf16.msra.mxu1 %v1945_v46  ;;  %1117 = vmatprep.subr.bf16.mxu0 %v1950_v47  ;;  %v358_v47 = vrot.slane %v345_v28, %v62_v20 }
 0x11d   :  { %1158 = vmatprep.subr.bf16.mxu1 %v1953_v48  ;;  %v362_v48 = vrot.slane %v345_v28, %v66_v23 }
 0x11f   :  { %1118 = vmatpush2.bf16.msra.mxu0 %v1948_v49 }
 0x120   :  { %1159 = vmatpush2.bf16.msra.mxu1 %v1951_v51  ;;  %1119 = vmatprep.subr.bf16.mxu0 %v1956_v52 }
 0x121   :  { %1160 = vmatprep.subr.bf16.mxu1 %v1959_v54 }
 0x123   :  { %1120 = vmatpush2.bf16.msra.mxu0 %v1954_v55 }
 0x124   :  { %1161 = vmatpush2.bf16.msra.mxu1 %v1957_v56  ;;  %1710 = vmatprep.subr.bf16.mxu0 %v1960_v57 }
 0x125   :  { %1732 = vmatprep.subr.bf16.mxu1 %v1976_v1 }
 0x126   :  { %1122 = vmatmul.mubr.bf16.vlgmr.msra.gmra.mxu0 %v2102_v50  ;;  %v1966_v50 = vld [vmem:[%s2225_s5 + $0x60] sm:$0xff]  }
 0x127   :  { %1163 = vmatmul.mubr.bf16.vlgmr.msra.gmra.mxu1 %v2104_v53  ;;  %1711 = vmatpush3.bf16.msra.mxu0 %v1961_v58  ;;  %v1967_v53 = vld [vmem:[%s2225_s5 + $0x20] sm:$0xff]  }
 0x128   :  { %1712 = vmatprep.subr.bf16.mxu0 %v1962_v59  ;;  %1733 = vmatpush3.bf16.msra.mxu1 %v1977_v2 }
 0x129   :  { %1734 = vmatprep.subr.bf16.mxu1 %v1978_v3 }
 0x12b   :  { %1713 = vmatpush3.bf16.msra.mxu0 %v1963_v60 }
 0x12c   :  { %1714 = vmatprep.subr.bf16.mxu0 %v1964_v61  ;;  %1735 = vmatpush3.bf16.msra.mxu1 %v1979_v5  ;;  %v1677_v5 = vld [vmem:[#allocation2] ss:$0 sm:$0xff] }
 0x12d   :  { %1736 = vmatprep.subr.bf16.mxu1 %v1980_v7 }
 0x12f   :  { %1715 = vmatpush3.bf16.msra.mxu0 %v1965_v62 }
 0x130   :  { %1716 = vmatprep.subr.bf16.mxu0 %v1966_v50  ;;  %1737 = vmatpush3.bf16.msra.mxu1 %v1981_v9 }
 0x131   :  { %1738 = vmatprep.subr.bf16.mxu1 %v1982_v11 }
 0x133   :  { %1717 = vmatpush3.bf16.msra.mxu0 %v1967_v53 }
 0x134   :  { %1718 = vmatprep.subr.bf16.mxu0 %v1968_v63  ;;  %1739 = vmatpush3.bf16.msra.mxu1 %v1983_v13 }
 0x135   :  { %1740 = vmatprep.subr.bf16.mxu1 %v1984_v15 }
 0x137   :  { %1719 = vmatpush3.bf16.msra.mxu0 %v1969_v0 }
 0x138   :  { %1720 = vmatprep.subr.bf16.mxu0 %v1970_v4  ;;  %1741 = vmatpush3.bf16.msra.mxu1 %v1985_v16 }
 0x139   :  { %1742 = vmatprep.subr.bf16.mxu1 %v1986_v17 }
 0x13b   :  { %1721 = vmatpush3.bf16.msra.mxu0 %v1971_v6 }
 0x13c   :  { %1722 = vmatprep.subr.bf16.mxu0 %v1972_v8  ;;  %1743 = vmatpush3.bf16.msra.mxu1 %v1987_v21 }
 0x13d   :  { %1744 = vmatprep.subr.bf16.mxu1 %v1988_v24 }
 0x13f   :  { %1723 = vmatpush3.bf16.msra.mxu0 %v1973_v10 }
 0x140   :  { %1724 = vmatprep.subr.bf16.mxu0 %v1974_v12  ;;  %1745 = vmatpush3.bf16.msra.mxu1 %v1989_v25 }
 0x141   :  { %1746 = vmatprep.subr.bf16.mxu1 %v1990_v26 }
 0x143   :  { %1725 = vmatpush3.bf16.msra.mxu0 %v1975_v14 }
 0x144   :  { %1747 = vmatpush3.bf16.msra.mxu1 %v1991_v27 }
 0x1a6   :  { %v1041_v31 = vpop.f32.mrf.mxu0 }
 0x1a7   :  { %v1042_v32 = vadd.f32 %v1041_v31, %v350_v29  ;;  %v1082_v33 = vpop.f32.mrf.mxu1 }
 0x1a8   :  { %v1043_v34 = vpop.f32.mrf.mxu0 }
 0x1a9   :  { %v1083_v35 = vadd.f32 %v1082_v33, %v1042_v32  ;;  %v1044_v36 = vadd.f32 %v1043_v34, %v354_v30  ;;  %v1084_v37 = vpop.f32.mrf.mxu1 }
 0x1aa   :  { %v1045_v38 = vpop.f32.mrf.mxu0 }
 0x1ab   :  { %vm1171_vm6 = vcmp.ge.f32.partialorder %v1083_v35, 0.0  ;;  %v1175_v39 = vmul.f32 0.2, %v1083_v35  ;;  %v1085_v40 = vadd.f32 %v1084_v37, %v1044_v36  ;;  %v1086_v41 = vpop.f32.mrf.mxu1 }
 0x1ac   :  { %v1046_v42 = vpop.f32.mrf.mxu0 }
 0x1ad   :  { %vm1172_vm7 = vcmp.ge.f32.partialorder %v1085_v40, 0.0  ;;  %v1176_v43 = vmul.f32 0.2, %v1085_v40  ;;  %v1087_v44 = vpop.f32.mrf.mxu1  ;;  %v1179_v19 = vsel %vm1171_vm6, %v1083_v35, %v1175_v39 }
 0x1ae   :  { %v1183_v22 = vpack.c.bf16 %v1179_v19, %v1179_v19 }
 0x1af   :  { %v1180_v45 = vsel %vm1172_vm7, %v1085_v40, %v1176_v43 }
 0x1b0   :  { %v1184_v46 = vpack.c.bf16 %v1180_v45, %v1180_v45 }
 0x1b2   :  { %1482 = vmatprep.mubr.bf16.mxu0 %v1184_v46 }
 0x1b3   :  { %1483 = vmatmul.mubr.bf16.vlgmr.msra.gmra.mxu0 %v1183_v22 }
 0x1e6   :  { %v1123_v49 = vpop.f32.mrf.mxu0 }
 0x1e7   :  { %v1124_v51 = vadd.f32 %v1123_v49, %v358_v47  ;;  %v1164_v52 = vpop.f32.mrf.mxu1 }
 0x1e8   :  { %v1125_v54 = vpop.f32.mrf.mxu0 }
 0x1e9   :  { %v1165_v55 = vadd.f32 %v1164_v52, %v1124_v51  ;;  %v1126_v56 = vadd.f32 %v1125_v54, %v362_v48  ;;  %v1166_v57 = vpop.f32.mrf.mxu1 }
 0x1ea   :  { %v1127_v58 = vpop.f32.mrf.mxu0 }
 0x1eb   :  { %vm1173_vm8 = vcmp.ge.f32.partialorder %v1165_v55, 0.0  ;;  %v1177_v59 = vmul.f32 0.2, %v1165_v55  ;;  %v1167_v60 = vadd.f32 %v1166_v57, %v1126_v56  ;;  %v1168_v61 = vpop.f32.mrf.mxu1 }
 0x1ec   :  { %v1128_v62 = vpop.f32.mrf.mxu0 }
 0x1ed   :  { %vm1174_vm9 = vcmp.ge.f32.partialorder %v1167_v60, 0.0  ;;  %v1178_v50 = vmul.f32 0.2, %v1167_v60  ;;  %v1169_v53 = vpop.f32.mrf.mxu1  ;;  %v1181_v20 = vsel %vm1173_vm8, %v1165_v55, %v1177_v59 }
 0x1ee   :  { %v1185_v23 = vpack.c.bf16 %v1181_v20, %v1181_v20 }
 0x1ef   :  { %v1182_v63 = vsel %vm1174_vm9, %v1167_v60, %v1178_v50 }
 0x1f0   :  { %v1186_v18 = vpack.c.bf16 %v1182_v63, %v1182_v63 }
 0x1f2   :  { %1522 = vmatprep.mubr.bf16.mxu1 %v1186_v18 }
 0x1f3   :  { %1523 = vmatmul.mubr.bf16.vlgmr.msra.gmra.mxu1 %v1185_v23 }
 0x273   :  { %v1726_v0 = vpop.f32.mrf.mxu0 }
 0x275   :  { %v1727_v1 = vpop.f32.mrf.mxu0 }
 0x276   :  { %v1728_v4 = vadd.f32 %v1727_v1, %v1726_v0 }
 0x277   :  { %v1729_v2 = vpop.f32.mrf.mxu0 }
 0x278   :  { %v1485_v8 = vadd.f32 %v1728_v4, %v1677_v5 }
 0x279   :  { %v1730_v3 = vpop.f32.mrf.mxu0 }
 0x2b3   :  { %v1748_v6 = vpop.f32.mrf.mxu1 }
 0x2b5   :  { %v1749_v7 = vpop.f32.mrf.mxu1 }
 0x2b6   :  { %v1750_v9 = vadd.f32 %v1749_v7, %v1748_v6 }
 0x2b7   :  { %v1751_v10 = vpop.f32.mrf.mxu1 }
 0x2b8   :  { %v1525_v11 = vadd.f32 %v1750_v9, %v1485_v8 }
 0x2b9   :  { %v1752_v12 = vpop.f32.mrf.mxu1 }
 0x2ba   :  { %1531 = vst.msk [vmem:[%s2227_s7] sm:$0xff] %vm1530_vm10, %v1525_v11 }
 0x2bb   :  { %1536 = vsyncpa [#allocation4], 1 }

</bundles_post_ra>
